<compile_context>
chip_gen: v5e
topology: v5e:2x2
jax: 0.10.0
libtpu: 0.0.40
codegen_flags: <defaults>
</compile_context>

<pallas_src>
import functools

import jax
import jax.numpy as jnp
from jax import lax
from jax.experimental import pallas as pl
from jax.experimental.pallas import tpu as pltpu


def _round_up(v, m):
    return (v + m - 1) // m * m


def _pick_tile(n_p, cap):
    """Largest multiple of 128 that divides n_p and is <= cap (>= 128)."""
    best = 128
    for cand in range(128, min(cap, n_p) + 1, 128):
        if n_p % cand == 0:
            best = cand
    return best


def _decoder_tiles(n_p, hp):
    """Decoder tile sizes keeping resident z + double-buffered output tile
    comfortably inside v5e's 16 MiB default scoped-VMEM budget."""
    tile_i = _pick_tile(n_p, 512)
    z_bytes = n_p * hp * 2                       # resident bf16 z
    tile_budget = max((12 << 20) - z_bytes, 128 * 1024)
    max_tj = max(128, (tile_budget // (4 * tile_i)) // 128 * 128)
    tile_j = _pick_tile(n_p, min(2048, max_tj))  # wide lane-dense output tiles
    return tile_i, tile_j


def _pad_cast(a, shape, dtype):
    """Zero-pad 2-D `a` to `shape` and cast to `dtype` (no-op if it already matches)."""
    if a.shape == shape and a.dtype == dtype:
        return a
    out = jnp.zeros(shape, dtype)
    return out.at[: a.shape[0], : a.shape[1]].set(a.astype(dtype))


# ---------------------------------------------------------------------------
# Kernels
# ---------------------------------------------------------------------------
def _node_linear_kernel(x_ref, w_ref, s_ref):
    """Per-row-block feature transform: s1 = x @ W1 (bf16 in, f32 acc, bf16 out)."""
    s_ref[...] = jnp.dot(x_ref[...], w_ref[...],
                         preferred_element_type=jnp.float32).astype(s_ref.dtype)


def _gc1_fused_kernel(adj_ref, s1_ref, w2_ref, s2_ref, acc_ref):
    """K-tiled gc1 aggregation fused with the gc2 feature transform.

    acc += adj[i, k] @ s1[k]          (every k step, f32 accumulator)
    s2[i] = relu(acc) @ W2            (last k step only, bf16 store)
    """
    k = pl.program_id(1)

    @pl.when(k == 0)
    def _():
        acc_ref[...] = jnp.zeros_like(acc_ref)

    acc_ref[...] += jnp.dot(adj_ref[...], s1_ref[...],
                            preferred_element_type=jnp.float32)

    @pl.when(k == pl.num_programs(1) - 1)
    def _():
        h1 = jnp.maximum(acc_ref[...], 0.0).astype(jnp.bfloat16)
        s2_ref[...] = jnp.dot(h1, w2_ref[...],
                              preferred_element_type=jnp.float32
                              ).astype(s2_ref.dtype)


def _gc2_aggregate_kernel(adj_ref, s2_ref, z_ref, acc_ref):
    """K-tiled gc2 aggregation (identity activation): z = adj @ s2."""
    k = pl.program_id(1)

    @pl.when(k == 0)
    def _():
        acc_ref[...] = jnp.zeros_like(acc_ref)

    acc_ref[...] += jnp.dot(adj_ref[...], s2_ref[...],
                            preferred_element_type=jnp.float32)

    @pl.when(k == pl.num_programs(1) - 1)
    def _():
        z_ref[...] = acc_ref[...].astype(z_ref.dtype)


def _decoder_kernel(z_ref, out_ref, *, tile_i, tile_j):
    """adj_rec tile (i, j) = z_i @ z_j.T; z is fully VMEM-resident, sliced here."""
    i = pl.program_id(0)
    j = pl.program_id(1)
    zi = z_ref[pl.ds(pl.multiple_of(i * tile_i, 128), tile_i), :]
    zj = z_ref[pl.ds(pl.multiple_of(j * tile_j, 128), tile_j), :]
    out_ref[...] = lax.dot_general(
        zi, zj,
        dimension_numbers=(((1,), (1,)), ((), ())),
        preferred_element_type=jnp.float32).astype(out_ref.dtype)


# ---------------------------------------------------------------------------
# pallas_call wrappers
# ---------------------------------------------------------------------------
def _node_linear(x_p, w1_p, *, block):
    n_p, f = x_p.shape
    h1p = w1_p.shape[1]
    return pl.pallas_call(
        _node_linear_kernel,
        out_shape=jax.ShapeDtypeStruct((n_p, h1p), jnp.bfloat16),
        grid=(n_p // block,),
        in_specs=[
            pl.BlockSpec((block, f), lambda i: (i, 0)),
            pl.BlockSpec((f, h1p), lambda i: (0, 0),
                         pipeline_mode=pl.Buffered(1)),        # resident weight
        ],
        out_specs=pl.BlockSpec((block, h1p), lambda i: (i, 0)),
        compiler_params=pltpu.CompilerParams(
            dimension_semantics=("parallel",)),
    )(x_p, w1_p)


def _gc1_aggregate_fused(adj_p, s1, w2_p, *, block):
    n_p = adj_p.shape[0]
    h1p = s1.shape[1]
    h2p = w2_p.shape[1]
    return pl.pallas_call(
        _gc1_fused_kernel,
        out_shape=jax.ShapeDtypeStruct((n_p, h2p), jnp.bfloat16),
        grid=(n_p // block, n_p // block),
        in_specs=[
            pl.BlockSpec((block, block), lambda i, k: (i, k)),   # adj stream
            pl.BlockSpec((block, h1p), lambda i, k: (k, 0)),     # s1 k-stripe
            pl.BlockSpec((h1p, h2p), lambda i, k: (0, 0),        # resident W2
                         pipeline_mode=pl.Buffered(1)),
        ],
        out_specs=pl.BlockSpec((block, h2p), lambda i, k: (i, 0)),
        scratch_shapes=[pltpu.VMEM((block, h1p), jnp.float32)],
        compiler_params=pltpu.CompilerParams(
            dimension_semantics=("parallel", "arbitrary")),
    )(adj_p, s1, w2_p)


def _gc2_aggregate(adj_p, s2, *, block):
    n_p = adj_p.shape[0]
    h2p = s2.shape[1]
    return pl.pallas_call(
        _gc2_aggregate_kernel,
        out_shape=jax.ShapeDtypeStruct((n_p, h2p), jnp.float32),
        grid=(n_p // block, n_p // block),
        in_specs=[
            pl.BlockSpec((block, block), lambda i, k: (i, k)),   # adj stream
            pl.BlockSpec((block, h2p), lambda i, k: (k, 0)),     # s2 k-stripe
        ],
        out_specs=pl.BlockSpec((block, h2p), lambda i, k: (i, 0)),
        scratch_shapes=[pltpu.VMEM((block, h2p), jnp.float32)],
        compiler_params=pltpu.CompilerParams(
            dimension_semantics=("parallel", "arbitrary")),
    )(adj_p, s2)


def _inner_product_decode(z_bf16, *, tile_i, tile_j):
    n_p, hp = z_bf16.shape
    kernel = functools.partial(_decoder_kernel, tile_i=tile_i, tile_j=tile_j)
    return pl.pallas_call(
        kernel,
        out_shape=jax.ShapeDtypeStruct((n_p, n_p), jnp.bfloat16),
        grid=(n_p // tile_i, n_p // tile_j),
        in_specs=[
            pl.BlockSpec((n_p, hp), lambda i, j: (0, 0),         # z resident, DMA'd once
                         pipeline_mode=pl.Buffered(1)),
        ],
        out_specs=pl.BlockSpec((tile_i, tile_j), lambda i, j: (i, j)),
        compiler_params=pltpu.CompilerParams(
            dimension_semantics=("parallel", "parallel")),
    )(z_bf16)


# ---------------------------------------------------------------------------
# Public forward
# ---------------------------------------------------------------------------
def gcn_model_ae_forward(x, adj, w1, w2):
    """Returns (adj_reconstruction logits [N, N], node embeddings z [N, H2])."""
    n, f = x.shape
    h1_dim = w1.shape[1]
    h2_dim = w2.shape[1]
    assert w1.shape[0] == f and w2.shape[0] == h1_dim

    n_p = _round_up(n, 128)
    h1p = _round_up(h1_dim, 128)   # lane-dense hidden dims
    h2p = _round_up(h2_dim, 128)
    assert adj.shape in ((n, n), (n_p, n_p))

    block = _pick_tile(n_p, 512)                 # row & reduction tile (aggregations)
    tile_i, tile_j = _decoder_tiles(n_p, h2p)    # decoder output tile

    # bf16 operands (MXU-native); padded rows/cols contribute exactly zero.
    x_p = _pad_cast(x, (n_p, f), jnp.bfloat16)
    w1_p = _pad_cast(w1, (f, h1p), jnp.bfloat16)
    w2_p = _pad_cast(w2, (h1p, h2p), jnp.bfloat16)
    # Skips the N^2 pad/cast pass if the caller already supplies padded bf16 adj.
    adj_p = _pad_cast(adj, (n_p, n_p), jnp.bfloat16)

    # --- encoder ------------------------------------------------------------
    # TODO(synk): F.dropout is a training-time op (eval-mode no-op); not modeled.
    s1 = _node_linear(x_p, w1_p, block=block)                      # [Np, H1p] bf16
    s2 = _gc1_aggregate_fused(adj_p, s1, w2_p, block=block)        # [Np, H2p] bf16
    z = _gc2_aggregate(adj_p, s2, block=block)                     # [Np, H2p] f32

    # --- inner-product decoder (reads only the resident bf16 z) --------------
    adj_rec = _inner_product_decode(z.astype(jnp.bfloat16),
                                    tile_i=tile_i, tile_j=tile_j)  # [Np, Np] bf16

    return adj_rec[:n, :n], z[:n, :h2_dim]


# ---------------------------------------------------------------------------
# Reference & smoke test
# ---------------------------------------------------------------------------
def _reference_f32(x, adj, w1, w2):
    h1 = jnp.maximum(adj @ (x @ w1), 0.0)
    z = adj @ (h1 @ w2)
    return z @ z.T, z


if __name__ == "__main__":
    # Small, TPU-friendly shapes consistent with the module's forward.
    N = 128            # number of graph nodes
    F_IN = 64          # input_feat_dim
    H1 = 32            # hidden_dim1
    H2 = 16            # hidden_dim2

    key = jax.random.PRNGKey(0)
    kx, ka, k1, k2 = jax.random.split(key, 4)

    x = jax.random.normal(kx, (N, F_IN), dtype=jnp.float32)

    # Symmetric, row-normalized dense adjacency (deterministic).
    a_raw = (jax.random.uniform(ka, (N, N)) < 0.05).astype(jnp.float32)
    a_sym = jnp.maximum(a_raw, a_raw.T) + jnp.eye(N, dtype=jnp.float32)
    adj = a_sym / jnp.sum(a_sym, axis=1, keepdims=True)

    # Glorot-style deterministic weight init (matches Parameter shapes in __init__).
    w1 = jax.random.uniform(k1, (F_IN, H1), dtype=jnp.float32,
                            minval=-1.0, maxval=1.0) * (6.0 / (F_IN + H1)) ** 0.5
    w2 = jax.random.uniform(k2, (H1, H2), dtype=jnp.float32,
                            minval=-1.0, maxval=1.0) * (6.0 / (H1 + H2)) ** 0.5

    fwd = jax.jit(gcn_model_ae_forward)
    # Producer-side bf16 cast of adj: the wrapper's N^2 pad/cast pass is skipped.
    adj_rec, node_emb = fwd(x, adj.astype(jnp.bfloat16), w1, w2)
    jax.block_until_ready((adj_rec, node_emb))

    ref_rec, ref_emb = _reference_f32(x, adj, w1, w2)
    assert adj_rec.shape == (N, N) and node_emb.shape == (N, H2)
    # Tolerances cover end-to-end bf16 streaming (adj / x / W / s1 / s2 / z /
    # adj_rec); every matmul accumulates in f32.
    assert jnp.allclose(node_emb, ref_emb, atol=2e-2, rtol=3e-2)
    assert jnp.allclose(adj_rec.astype(jnp.float32), ref_rec, atol=3e-2, rtol=5e-2)

    print("KERNEL_OK")
</pallas_src>

<mosaic_0001>
module attributes {stable_mosaic.version = 11 : i64} {
  func.func @_gc2_aggregate_kernel(%arg0: i32, %arg1: i32, %arg2: memref<128x128xbf16, #tpu.memory_space<vmem>>, %arg3: memref<128x128xbf16, #tpu.memory_space<vmem>>, %arg4: memref<128x128xf32, #tpu.memory_space<vmem>>, %arg5: memref<128x128xf32, #tpu.memory_space<vmem>>) attributes {dimension_semantics = [#tpu.dimension_semantics<parallel>, #tpu.dimension_semantics<arbitrary>], iteration_bounds = array<i64: 1, 1>, scalar_prefetch = 0 : i64, scratch_operands = 1 : i64, tpu.core_type = #tpu.core_type<tc>, window_params = [{transform_indices = @transform_0, window_bounds = array<i64: 128, 128>}, {transform_indices = @transform_1, window_bounds = array<i64: 128, 128>}, {transform_indices = @transform_2, window_bounds = array<i64: 128, 128>}]} {
    %c0_i32 = arith.constant 0 : i32
    %0 = arith.cmpi eq, %arg1, %c0_i32 : i32
    %1 = arith.extui %0 : i1 to i32
    %c0_i32_0 = arith.constant 0 : i32
    %2 = arith.cmpi ne, %1, %c0_i32_0 : i32
    scf.if %2 {
      %cst_10 = arith.constant 0.000000e+00 : f32
      %12 = vector.broadcast %cst_10 : f32 to vector<128x128xf32>
      %c0_11 = arith.constant 0 : index
      %c0_12 = arith.constant 0 : index
      %13 = vector.load %arg5[%c0_11, %c0_12] : memref<128x128xf32, #tpu.memory_space<vmem>>, vector<128x128xf32>
      tpu.vector_store %arg5[%c0_11, %c0_12], %12 {strides = array<i32>} : memref<128x128xf32, #tpu.memory_space<vmem>>, vector<128x128xf32>,
    } else {
    }
    %c0 = arith.constant 0 : index
    %c0_1 = arith.constant 0 : index
    %3 = vector.load %arg5[%c0, %c0_1] : memref<128x128xf32, #tpu.memory_space<vmem>>, vector<128x128xf32>
    %c0_2 = arith.constant 0 : index
    %c0_3 = arith.constant 0 : index
    %4 = vector.load %arg2[%c0_2, %c0_3] : memref<128x128xbf16, #tpu.memory_space<vmem>>, vector<128x128xbf16>
    %c0_4 = arith.constant 0 : index
    %c0_5 = arith.constant 0 : index
    %5 = vector.load %arg3[%c0_4, %c0_5] : memref<128x128xbf16, #tpu.memory_space<vmem>>, vector<128x128xbf16>
    %cst = arith.constant dense<0.000000e+00> : vector<128x128xf32>
    %6 = tpu.matmul %4, %5, %cst {dimension_numbers = #tpu.dot_dimension_numbers<[1], [0], [0], [1], [0, 0, 1, 1], [], []>} : vector<128x128xbf16>, vector<128x128xbf16>, vector<128x128xf32> -> vector<128x128xf32>
    %7 = arith.addf %3, %6 : vector<128x128xf32>
    %c0_6 = arith.constant 0 : index
    %c0_7 = arith.constant 0 : index
    %8 = vector.load %arg5[%c0_6, %c0_7] : memref<128x128xf32, #tpu.memory_space<vmem>>, vector<128x128xf32>
    tpu.vector_store %arg5[%c0_6, %c0_7], %7 {strides = array<i32>} : memref<128x128xf32, #tpu.memory_space<vmem>>, vector<128x128xf32>,
    %c0_i32_8 = arith.constant 0 : i32
    %9 = arith.cmpi eq, %arg1, %c0_i32_8 : i32
    %10 = arith.extui %9 : i1 to i32
    %c0_i32_9 = arith.constant 0 : i32
    %11 = arith.cmpi ne, %10, %c0_i32_9 : i32
    scf.if %11 {
      %c0_10 = arith.constant 0 : index
      %c0_11 = arith.constant 0 : index
      %12 = vector.load %arg5[%c0_10, %c0_11] : memref<128x128xf32, #tpu.memory_space<vmem>>, vector<128x128xf32>
      %c0_12 = arith.constant 0 : index
      %c0_13 = arith.constant 0 : index
      %13 = vector.load %arg4[%c0_12, %c0_13] : memref<128x128xf32, #tpu.memory_space<vmem>>, vector<128x128xf32>
      tpu.vector_store %arg4[%c0_12, %c0_13], %12 {strides = array<i32>} : memref<128x128xf32, #tpu.memory_space<vmem>>, vector<128x128xf32>,
    } else {
    }
    return
  }
  func.func @transform_0(%arg0: i32, %arg1: i32) -> (i32, i32) {
    %c0_i32 = arith.constant 0 : i32
    return %arg0, %arg1 : i32, i32
  }
  func.func @transform_1(%arg0: i32, %arg1: i32) -> (i32, i32) {
    %c0_i32 = arith.constant 0 : i32
    %c0_i32_0 = arith.constant 0 : i32
    return %arg1, %c0_i32 : i32, i32
  }
  func.func @transform_2(%arg0: i32, %arg1: i32) -> (i32, i32) {
    %c0_i32 = arith.constant 0 : i32
    %c0_i32_0 = arith.constant 0 : i32
    return %arg0, %c0_i32 : i32, i32
  }
}

module attributes {stable_mosaic.version = 11 : i64} {
  func.func @_gc1_fused_kernel(%arg0: i32, %arg1: i32, %arg2: memref<128x128xbf16, #tpu.memory_space<vmem>>, %arg3: memref<128x128xbf16, #tpu.memory_space<vmem>>, %arg4: memref<128x128xbf16, #tpu.memory_space<vmem>>, %arg5: memref<128x128xbf16, #tpu.memory_space<vmem>>, %arg6: memref<128x128xf32, #tpu.memory_space<vmem>>) attributes {dimension_semantics = [#tpu.dimension_semantics<parallel>, #tpu.dimension_semantics<arbitrary>], iteration_bounds = array<i64: 1, 1>, scalar_prefetch = 0 : i64, scratch_operands = 1 : i64, tpu.core_type = #tpu.core_type<tc>, window_params = [{transform_indices = @transform_0, window_bounds = array<i64: 128, 128>}, {transform_indices = @transform_1, window_bounds = array<i64: 128, 128>}, {pipeline_mode = #tpu.pipeline_mode<synchronous>, transform_indices = @transform_2, window_bounds = array<i64: 128, 128>}, {transform_indices = @transform_3, window_bounds = array<i64: 128, 128>}]} {
    %c0_i32 = arith.constant 0 : i32
    %0 = arith.cmpi eq, %arg1, %c0_i32 : i32
    %1 = arith.extui %0 : i1 to i32
    %c0_i32_0 = arith.constant 0 : i32
    %2 = arith.cmpi ne, %1, %c0_i32_0 : i32
    scf.if %2 {
      %cst_10 = arith.constant 0.000000e+00 : f32
      %12 = vector.broadcast %cst_10 : f32 to vector<128x128xf32>
      %c0_11 = arith.constant 0 : index
      %c0_12 = arith.constant 0 : index
      %13 = vector.load %arg6[%c0_11, %c0_12] : memref<128x128xf32, #tpu.memory_space<vmem>>, vector<128x128xf32>
      tpu.vector_store %arg6[%c0_11, %c0_12], %12 {strides = array<i32>} : memref<128x128xf32, #tpu.memory_space<vmem>>, vector<128x128xf32>,
    } else {
    }
    %c0 = arith.constant 0 : index
    %c0_1 = arith.constant 0 : index
    %3 = vector.load %arg6[%c0, %c0_1] : memref<128x128xf32, #tpu.memory_space<vmem>>, vector<128x128xf32>
    %c0_2 = arith.constant 0 : index
    %c0_3 = arith.constant 0 : index
    %4 = vector.load %arg2[%c0_2, %c0_3] : memref<128x128xbf16, #tpu.memory_space<vmem>>, vector<128x128xbf16>
    %c0_4 = arith.constant 0 : index
    %c0_5 = arith.constant 0 : index
    %5 = vector.load %arg3[%c0_4, %c0_5] : memref<128x128xbf16, #tpu.memory_space<vmem>>, vector<128x128xbf16>
    %cst = arith.constant dense<0.000000e+00> : vector<128x128xf32>
    %6 = tpu.matmul %4, %5, %cst {dimension_numbers = #tpu.dot_dimension_numbers<[1], [0], [0], [1], [0, 0, 1, 1], [], []>} : vector<128x128xbf16>, vector<128x128xbf16>, vector<128x128xf32> -> vector<128x128xf32>
    %7 = arith.addf %3, %6 : vector<128x128xf32>
    %c0_6 = arith.constant 0 : index
    %c0_7 = arith.constant 0 : index
    %8 = vector.load %arg6[%c0_6, %c0_7] : memref<128x128xf32, #tpu.memory_space<vmem>>, vector<128x128xf32>
    tpu.vector_store %arg6[%c0_6, %c0_7], %7 {strides = array<i32>} : memref<128x128xf32, #tpu.memory_space<vmem>>, vector<128x128xf32>,
    %c0_i32_8 = arith.constant 0 : i32
    %9 = arith.cmpi eq, %arg1, %c0_i32_8 : i32
    %10 = arith.extui %9 : i1 to i32
    %c0_i32_9 = arith.constant 0 : i32
    %11 = arith.cmpi ne, %10, %c0_i32_9 : i32
    scf.if %11 {
      %c0_10 = arith.constant 0 : index
      %c0_11 = arith.constant 0 : index
      %12 = vector.load %arg6[%c0_10, %c0_11] : memref<128x128xf32, #tpu.memory_space<vmem>>, vector<128x128xf32>
      %cst_12 = arith.constant 0.000000e+00 : f32
      %13 = vector.broadcast %cst_12 : f32 to vector<128x128xf32>
      %14 = arith.maximumf %12, %13 : vector<128x128xf32>
      %15 = arith.truncf %14 : vector<128x128xf32> to vector<128x128xbf16>
      %c0_13 = arith.constant 0 : index
      %c0_14 = arith.constant 0 : index
      %16 = vector.load %arg4[%c0_13, %c0_14] : memref<128x128xbf16, #tpu.memory_space<vmem>>, vector<128x128xbf16>
      %cst_15 = arith.constant dense<0.000000e+00> : vector<128x128xf32>
      %17 = tpu.matmul %15, %16, %cst_15 {dimension_numbers = #tpu.dot_dimension_numbers<[1], [0], [0], [1], [0, 0, 1, 1], [], []>} : vector<128x128xbf16>, vector<128x128xbf16>, vector<128x128xf32> -> vector<128x128xf32>
      %18 = arith.truncf %17 : vector<128x128xf32> to vector<128x128xbf16>
      %c0_16 = arith.constant 0 : index
      %c0_17 = arith.constant 0 : index
      %19 = vector.load %arg5[%c0_16, %c0_17] : memref<128x128xbf16, #tpu.memory_space<vmem>>, vector<128x128xbf16>
      tpu.vector_store %arg5[%c0_16, %c0_17], %18 {strides = array<i32>} : memref<128x128xbf16, #tpu.memory_space<vmem>>, vector<128x128xbf16>,
    } else {
    }
    return
  }
  func.func @transform_0(%arg0: i32, %arg1: i32) -> (i32, i32) {
    %c0_i32 = arith.constant 0 : i32
    return %arg0, %arg1 : i32, i32
  }
  func.func @transform_1(%arg0: i32, %arg1: i32) -> (i32, i32) {
    %c0_i32 = arith.constant 0 : i32
    %c0_i32_0 = arith.constant 0 : i32
    return %arg1, %c0_i32 : i32, i32
  }
  func.func @transform_2(%arg0: i32, %arg1: i32) -> (i32, i32) {
    %c0_i32 = arith.constant 0 : i32
    %c0_i32_0 = arith.constant 0 : i32
    %c0_i32_1 = arith.constant 0 : i32
    return %c0_i32, %c0_i32_0 : i32, i32
  }
  func.func @transform_3(%arg0: i32, %arg1: i32) -> (i32, i32) {
    %c0_i32 = arith.constant 0 : i32
    %c0_i32_0 = arith.constant 0 : i32
    return %arg0, %c0_i32 : i32, i32
  }
}

module attributes {stable_mosaic.version = 11 : i64} {
  func.func @_node_linear_kernel(%arg0: i32, %arg1: memref<128x64xbf16, #tpu.memory_space<vmem>>, %arg2: memref<64x128xbf16, #tpu.memory_space<vmem>>, %arg3: memref<128x128xbf16, #tpu.memory_space<vmem>>) attributes {dimension_semantics = [#tpu.dimension_semantics<parallel>], iteration_bounds = array<i64: 1>, scalar_prefetch = 0 : i64, scratch_operands = 0 : i64, tpu.core_type = #tpu.core_type<tc>, window_params = [{transform_indices = @transform_0, window_bounds = array<i64: 128, 64>}, {pipeline_mode = #tpu.pipeline_mode<synchronous>, transform_indices = @transform_1, window_bounds = array<i64: 64, 128>}, {transform_indices = @transform_2, window_bounds = array<i64: 128, 128>}]} {
    %c0 = arith.constant 0 : index
    %c0_0 = arith.constant 0 : index
    %0 = vector.load %arg1[%c0, %c0_0] : memref<128x64xbf16, #tpu.memory_space<vmem>>, vector<128x64xbf16>
    %c0_1 = arith.constant 0 : index
    %c0_2 = arith.constant 0 : index
    %1 = vector.load %arg2[%c0_1, %c0_2] : memref<64x128xbf16, #tpu.memory_space<vmem>>, vector<64x128xbf16>
    %cst = arith.constant dense<0.000000e+00> : vector<128x128xf32>
    %2 = tpu.matmul %0, %1, %cst {dimension_numbers = #tpu.dot_dimension_numbers<[1], [0], [0], [1], [0, 0, 1, 1], [], []>} : vector<128x64xbf16>, vector<64x128xbf16>, vector<128x128xf32> -> vector<128x128xf32>
    %3 = arith.truncf %2 : vector<128x128xf32> to vector<128x128xbf16>
    %c0_3 = arith.constant 0 : index
    %c0_4 = arith.constant 0 : index
    %4 = vector.load %arg3[%c0_3, %c0_4] : memref<128x128xbf16, #tpu.memory_space<vmem>>, vector<128x128xbf16>
    tpu.vector_store %arg3[%c0_3, %c0_4], %3 {strides = array<i32>} : memref<128x128xbf16, #tpu.memory_space<vmem>>, vector<128x128xbf16>,
    return
  }
  func.func @transform_0(%arg0: i32) -> (i32, i32) {
    %c0_i32 = arith.constant 0 : i32
    %c0_i32_0 = arith.constant 0 : i32
    return %arg0, %c0_i32 : i32, i32
  }
  func.func @transform_1(%arg0: i32) -> (i32, i32) {
    %c0_i32 = arith.constant 0 : i32
    %c0_i32_0 = arith.constant 0 : i32
    %c0_i32_1 = arith.constant 0 : i32
    return %c0_i32, %c0_i32_0 : i32, i32
  }
  func.func @transform_2(%arg0: i32) -> (i32, i32) {
    %c0_i32 = arith.constant 0 : i32
    %c0_i32_0 = arith.constant 0 : i32
    return %arg0, %c0_i32 : i32, i32
  }
}

module attributes {stable_mosaic.version = 11 : i64} {
  func.func @_decoder_kernel(%arg0: i32, %arg1: i32, %arg2: memref<128x128xbf16, #tpu.memory_space<vmem>>, %arg3: memref<128x128xbf16, #tpu.memory_space<vmem>>) attributes {dimension_semantics = [#tpu.dimension_semantics<parallel>, #tpu.dimension_semantics<parallel>], iteration_bounds = array<i64: 1, 1>, scalar_prefetch = 0 : i64, scratch_operands = 0 : i64, tpu.core_type = #tpu.core_type<tc>, window_params = [{pipeline_mode = #tpu.pipeline_mode<synchronous>, transform_indices = @transform_0, window_bounds = array<i64: 128, 128>}, {transform_indices = @transform_1, window_bounds = array<i64: 128, 128>}]} {
    %c128_i32 = arith.constant 128 : i32
    %0 = arith.muli %arg0, %c128_i32 : i32
    %1 = tpu.assume_multiple %0, 128 : i32
    %2 = arith.index_cast %1 : i32 to index
    %c0 = arith.constant 0 : index
    %3 = vector.load %arg2[%2, %c0] : memref<128x128xbf16, #tpu.memory_space<vmem>>, vector<128x128xbf16>
    %c128_i32_0 = arith.constant 128 : i32
    %4 = arith.muli %arg1, %c128_i32_0 : i32
    %5 = tpu.assume_multiple %4, 128 : i32
    %6 = arith.index_cast %5 : i32 to index
    %c0_1 = arith.constant 0 : index
    %7 = vector.load %arg2[%6, %c0_1] : memref<128x128xbf16, #tpu.memory_space<vmem>>, vector<128x128xbf16>
    %cst = arith.constant dense<0.000000e+00> : vector<128x128xf32>
    %8 = tpu.matmul %3, %7, %cst {dimension_numbers = #tpu.dot_dimension_numbers<[1], [1], [0], [0], [0, 0, 1, 0], [], []>} : vector<128x128xbf16>, vector<128x128xbf16>, vector<128x128xf32> -> vector<128x128xf32>
    %9 = arith.truncf %8 : vector<128x128xf32> to vector<128x128xbf16>
    %c0_2 = arith.constant 0 : index
    %c0_3 = arith.constant 0 : index
    %10 = vector.load %arg3[%c0_2, %c0_3] : memref<128x128xbf16, #tpu.memory_space<vmem>>, vector<128x128xbf16>
    tpu.vector_store %arg3[%c0_2, %c0_3], %9 {strides = array<i32>} : memref<128x128xbf16, #tpu.memory_space<vmem>>, vector<128x128xbf16>,
    return
  }
  func.func @transform_0(%arg0: i32, %arg1: i32) -> (i32, i32) {
    %c0_i32 = arith.constant 0 : i32
    %c0_i32_0 = arith.constant 0 : i32
    %c0_i32_1 = arith.constant 0 : i32
    return %c0_i32, %c0_i32_0 : i32, i32
  }
  func.func @transform_1(%arg0: i32, %arg1: i32) -> (i32, i32) {
    %c0_i32 = arith.constant 0 : i32
    return %arg0, %arg1 : i32, i32
  }
}

</mosaic_0001>

<bundles_post_ra>
// kernel: gcn_model_ae_forward.6
= control target key start
LH: loop header
LB: loop body
LE: loop exit
PB: predicated region body
PF: predicated region fallthrough
CT: control target
= control target key end

     0   :  { %s510_s1 = inlined_call_operand.vmem [shape: bf16[128,128], index: 1, kind: input, shape index: {}]   ;;  %s511_s0 = inlined_call_operand.vmem [shape: bf16[128,128], index: 0, kind: input, shape index: {}]   ;;  %s512_s2 = inlined_call_operand.vmem [shape: f32[128,128], index: 2, kind: output, shape index: {}]  }
   0x1   :  { %v374_v0 = vld [vmem:[%s510_s1 + $0x38] sm:$0xff]  ;;  %v373_v1 = vld [vmem:[%s510_s1 + $0x30] sm:$0xff]  ;;  %v372_v2 = vld [vmem:[%s510_s1 + $0x28] sm:$0xff] }
   0x2   :  { %175 = vmatpush.bf16.msra.mxu0 %v374_v0  ;;  %375 = vmatpush.bf16.msra.mxu1 %v374_v0  ;;  %v371_v3 = vld [vmem:[%s510_s1 + $0x20] sm:$0xff]  ;;  %v370_v4 = vld [vmem:[%s510_s1 + $0x18] sm:$0xff]  ;;  %v369_v5 = vld [vmem:[%s510_s1 + $0x10] sm:$0xff] }
   0x3   :  { %376 = vmatpush.bf16.msra.mxu2 %v374_v0  ;;  %377 = vmatpush.bf16.msra.mxu3 %v374_v0  ;;  %v368_v6 = vld [vmem:[%s510_s1 + $0x8] sm:$0xff]  ;;  %v367_v7 = vld [vmem:[%s510_s1] sm:$0xff]  ;;  %v361_v9 = vld [vmem:[%s511_s0 + $0x10] sm:$0xff] }
   0x4   :  { %v359_v8 = vld [vmem:[%s511_s0] sm:$0xff]  ;;  %v365_v11 = vld [vmem:[%s511_s0 + $0x30] sm:$0xff]  ;;  %v360_v12 = vld [vmem:[%s511_s0 + $0x8] sm:$0xff] }
   0x5   :  { %v363_v10 = vld [vmem:[%s511_s0 + $0x20] sm:$0xff]  ;;  %v362_v13 = vld [vmem:[%s511_s0 + $0x18] sm:$0xff]  ;;  %v364_v14 = vld [vmem:[%s511_s0 + $0x28] sm:$0xff] }
   0x6   :  { %176 = vmatpush.bf16.msra.mxu0 %v373_v1  ;;  %378 = vmatpush.bf16.msra.mxu1 %v373_v1  ;;  %v366_v15 = vld [vmem:[%s511_s0 + $0x38] sm:$0xff] }
   0x7   :  { %379 = vmatpush.bf16.msra.mxu2 %v373_v1  ;;  %380 = vmatpush.bf16.msra.mxu3 %v373_v1 }
   0xa   :  { %177 = vmatpush.bf16.msra.mxu0 %v372_v2  ;;  %381 = vmatpush.bf16.msra.mxu1 %v372_v2 }
   0xb   :  { %382 = vmatpush.bf16.msra.mxu2 %v372_v2  ;;  %383 = vmatpush.bf16.msra.mxu3 %v372_v2 }
   0xe   :  { %178 = vmatpush.bf16.msra.mxu0 %v371_v3  ;;  %384 = vmatpush.bf16.msra.mxu1 %v371_v3 }
   0xf   :  { %385 = vmatpush.bf16.msra.mxu2 %v371_v3  ;;  %386 = vmatpush.bf16.msra.mxu3 %v371_v3 }
  0x12   :  { %179 = vmatpush.bf16.msra.mxu0 %v370_v4  ;;  %387 = vmatpush.bf16.msra.mxu1 %v370_v4 }
  0x13   :  { %388 = vmatpush.bf16.msra.mxu2 %v370_v4  ;;  %389 = vmatpush.bf16.msra.mxu3 %v370_v4 }
  0x16   :  { %180 = vmatpush.bf16.msra.mxu0 %v369_v5  ;;  %390 = vmatpush.bf16.msra.mxu1 %v369_v5 }
  0x17   :  { %391 = vmatpush.bf16.msra.mxu2 %v369_v5  ;;  %392 = vmatpush.bf16.msra.mxu3 %v369_v5 }
  0x1a   :  { %181 = vmatpush.bf16.msra.mxu0 %v368_v6  ;;  %393 = vmatpush.bf16.msra.mxu1 %v368_v6 }
  0x1b   :  { %394 = vmatpush.bf16.msra.mxu2 %v368_v6  ;;  %395 = vmatpush.bf16.msra.mxu3 %v368_v6 }
  0x1e   :  { %182 = vmatpush.bf16.msra.mxu0 %v367_v7  ;;  %396 = vmatpush.bf16.msra.mxu1 %v367_v7 }
  0x1f   :  { %397 = vmatpush.bf16.msra.mxu2 %v367_v7  ;;  %398 = vmatpush.bf16.msra.mxu3 %v367_v7 }
  0x21   :  { %183 = vmatmul.bf16.vlgmr.msra.gmra.mxu0 %v359_v8  ;;  %193 = vmatmul.bf16.vlgmr.msra.gmra.mxu1 %v361_v9 }
  0x22   :  { %203 = vmatmul.bf16.vlgmr.msra.gmra.mxu2 %v363_v10  ;;  %213 = vmatmul.bf16.vlgmr.msra.gmra.mxu3 %v365_v11 }
  0x31   :  { %188 = vmatmul.bf16.gmra.mxu0 %v360_v12  ;;  %198 = vmatmul.bf16.gmra.mxu1 %v362_v13 }
  0x32   :  { %208 = vmatmul.bf16.gmra.mxu2 %v364_v14  ;;  %218 = vmatmul.bf16.gmra.mxu3 %v366_v15 }
  0x9e   :  { %v184_v16 = vpop.f32.mrf.mxu0  ;;  %v194_v17 = vpop.f32.mrf.mxu1 }
  0x9f   :  { %275 = vst [vmem:[%s512_s2] sm:$0xff] %v184_v16 }
  0xa0   :  { %279 = vst [vmem:[%s512_s2 + $0x20] sm:$0xff] %v194_v17 }
  0xa5   :  { %v204_v18 = vpop.f32.mrf.mxu2  ;;  %v214_v19 = vpop.f32.mrf.mxu3 }
  0xa6   :  { %283 = vst [vmem:[%s512_s2 + $0x40] sm:$0xff] %v204_v18  ;;  %v186_v20 = vpop.f32.mrf.mxu0  ;;  %v196_v21 = vpop.f32.mrf.mxu1 }
  0xa7   :  { %287 = vst [vmem:[%s512_s2 + $0x60] sm:$0xff] %v214_v19 }
  0xa8   :  { %276 = vst [vmem:[%s512_s2 + $0x8] sm:$0xff] %v186_v20 }
  0xa9   :  { %280 = vst [vmem:[%s512_s2 + $0x28] sm:$0xff] %v196_v21 }
  0xad   :  { %v206_v22 = vpop.f32.mrf.mxu2  ;;  %v216_v23 = vpop.f32.mrf.mxu3 }
  0xae   :  { %284 = vst [vmem:[%s512_s2 + $0x48] sm:$0xff] %v206_v22  ;;  %v189_v24 = vpop.f32.mrf.mxu0  ;;  %v199_v25 = vpop.f32.mrf.mxu1 }
  0xaf   :  { %288 = vst [vmem:[%s512_s2 + $0x68] sm:$0xff] %v216_v23 }
  0xb0   :  { %277 = vst [vmem:[%s512_s2 + $0x10] sm:$0xff] %v189_v24 }
  0xb1   :  { %281 = vst [vmem:[%s512_s2 + $0x30] sm:$0xff] %v199_v25 }
  0xb5   :  { %v209_v26 = vpop.f32.mrf.mxu2  ;;  %v219_v27 = vpop.f32.mrf.mxu3 }
  0xb6   :  { %285 = vst [vmem:[%s512_s2 + $0x50] sm:$0xff] %v209_v26  ;;  %v191_v28 = vpop.f32.mrf.mxu0  ;;  %v201_v29 = vpop.f32.mrf.mxu1 }
  0xb7   :  { %289 = vst [vmem:[%s512_s2 + $0x70] sm:$0xff] %v219_v27 }
  0xb8   :  { %278 = vst [vmem:[%s512_s2 + $0x18] sm:$0xff] %v191_v28 }
  0xb9   :  { %282 = vst [vmem:[%s512_s2 + $0x38] sm:$0xff] %v201_v29 }
  0xbd   :  { %v211_v30 = vpop.f32.mrf.mxu2  ;;  %v221_v31 = vpop.f32.mrf.mxu3 }
  0xbe   :  { %286 = vst [vmem:[%s512_s2 + $0x58] sm:$0xff] %v211_v30 }
  0xbf   :  { %290 = vst [vmem:[%s512_s2 + $0x78] sm:$0xff] %v221_v31 }

// kernel: gcn_model_ae_forward.5
= control target key start
LH: loop header
LB: loop body
LE: loop exit
PB: predicated region body
PF: predicated region fallthrough
CT: control target
= control target key end

     0   :  { %s750_s1 = inlined_call_operand.vmem [shape: bf16[128,128], index: 1, kind: input, shape index: {}]   ;;  %s751_s0 = inlined_call_operand.vmem [shape: bf16[128,128], index: 0, kind: input, shape index: {}]   ;;  %s752_s2 = inlined_call_operand.vmem [shape: bf16[128,128], index: 2, kind: input, shape index: {}]   ;;  %s753_s3 = inlined_call_operand.vmem [shape: bf16[128,128], index: 3, kind: output, shape index: {}]  }
   0x1   :  { %v562_v0 = vld [vmem:[%s750_s1 + $0x38] sm:$0xff]  ;;  %v561_v1 = vld [vmem:[%s750_s1 + $0x30] sm:$0xff]  ;;  %v560_v2 = vld [vmem:[%s750_s1 + $0x28] sm:$0xff] }
   0x2   :  { %178 = vmatpush.bf16.msra.mxu0 %v562_v0  ;;  %618 = vmatpush.bf16.msra.mxu2 %v562_v0  ;;  %v559_v3 = vld [vmem:[%s750_s1 + $0x20] sm:$0xff]  ;;  %v558_v4 = vld [vmem:[%s750_s1 + $0x18] sm:$0xff]  ;;  %v557_v5 = vld [vmem:[%s750_s1 + $0x10] sm:$0xff] }
   0x3   :  { %v556_v6 = vld [vmem:[%s750_s1 + $0x8] sm:$0xff]  ;;  %v555_v7 = vld [vmem:[%s750_s1] sm:$0xff]  ;;  %v570_v12 = vld [vmem:[%s752_s2 + $0x38] sm:$0xff] }
   0x4   :  { %v547_v8 = vld [vmem:[%s751_s0] sm:$0xff]  ;;  %v548_v10 = vld [vmem:[%s751_s0 + $0x8] sm:$0xff]  ;;  %366 = vmatpush.bf16.msra.mxu1 %v570_v12  ;;  %v569_v13 = vld [vmem:[%s752_s2 + $0x30] sm:$0xff]  ;;  %626 = vmatpush.bf16.msra.mxu3 %v570_v12 }
   0x5   :  { %v551_v9 = vld [vmem:[%s751_s0 + $0x20] sm:$0xff]  ;;  %v552_v11 = vld [vmem:[%s751_s0 + $0x28] sm:$0xff]  ;;  %v549_v16 = vld [vmem:[%s751_s0 + $0x10] sm:$0xff] }
   0x6   :  { %179 = vmatpush.bf16.msra.mxu0 %v561_v1  ;;  %619 = vmatpush.bf16.msra.mxu2 %v561_v1  ;;  %v568_v14 = vld [vmem:[%s752_s2 + $0x28] sm:$0xff]  ;;  %v567_v15 = vld [vmem:[%s752_s2 + $0x20] sm:$0xff]  ;;  %v553_v17 = vld [vmem:[%s751_s0 + $0x30] sm:$0xff] }
   0x7   :  { %v566_v18 = vld [vmem:[%s752_s2 + $0x18] sm:$0xff]  ;;  %v565_v21 = vld [vmem:[%s752_s2 + $0x10] sm:$0xff]  ;;  %v564_v22 = vld [vmem:[%s752_s2 + $0x8] sm:$0xff] }
   0x8   :  { %367 = vmatpush.bf16.msra.mxu1 %v569_v13  ;;  %627 = vmatpush.bf16.msra.mxu3 %v569_v13  ;;  %v550_v19 = vld [vmem:[%s751_s0 + $0x18] sm:$0xff]  ;;  %v563_v23 = vld [vmem:[%s752_s2] sm:$0xff] }
   0x9   :  { %v554_v20 = vld [vmem:[%s751_s0 + $0x38] sm:$0xff] }
   0xa   :  { %180 = vmatpush.bf16.msra.mxu0 %v560_v2  ;;  %620 = vmatpush.bf16.msra.mxu2 %v560_v2 }
   0xc   :  { %368 = vmatpush.bf16.msra.mxu1 %v568_v14  ;;  %628 = vmatpush.bf16.msra.mxu3 %v568_v14 }
   0xe   :  { %181 = vmatpush.bf16.msra.mxu0 %v559_v3  ;;  %621 = vmatpush.bf16.msra.mxu2 %v559_v3 }
  0x10   :  { %369 = vmatpush.bf16.msra.mxu1 %v567_v15  ;;  %629 = vmatpush.bf16.msra.mxu3 %v567_v15 }
  0x12   :  { %182 = vmatpush.bf16.msra.mxu0 %v558_v4  ;;  %622 = vmatpush.bf16.msra.mxu2 %v558_v4 }
  0x14   :  { %370 = vmatpush.bf16.msra.mxu1 %v566_v18  ;;  %630 = vmatpush.bf16.msra.mxu3 %v566_v18 }
  0x16   :  { %183 = vmatpush.bf16.msra.mxu0 %v557_v5  ;;  %623 = vmatpush.bf16.msra.mxu2 %v557_v5 }
  0x18   :  { %371 = vmatpush.bf16.msra.mxu1 %v565_v21  ;;  %631 = vmatpush.bf16.msra.mxu3 %v565_v21 }
  0x1a   :  { %184 = vmatpush.bf16.msra.mxu0 %v556_v6  ;;  %624 = vmatpush.bf16.msra.mxu2 %v556_v6 }
  0x1c   :  { %372 = vmatpush.bf16.msra.mxu1 %v564_v22  ;;  %632 = vmatpush.bf16.msra.mxu3 %v564_v22 }
  0x1e   :  { %185 = vmatpush.bf16.msra.mxu0 %v555_v7  ;;  %625 = vmatpush.bf16.msra.mxu2 %v555_v7 }
  0x20   :  { %373 = vmatpush.bf16.msra.mxu1 %v563_v23  ;;  %633 = vmatpush.bf16.msra.mxu3 %v563_v23 }
  0x21   :  { %186 = vmatmul.bf16.vlgmr.msra.gmra.mxu0 %v547_v8  ;;  %206 = vmatmul.bf16.vlgmr.msra.gmra.mxu2 %v551_v9 }
  0x31   :  { %191 = vmatmul.bf16.gmra.mxu0 %v548_v10  ;;  %211 = vmatmul.bf16.gmra.mxu2 %v552_v11 }
  0x41   :  { %196 = vmatmul.bf16.gmra.mxu0 %v549_v16  ;;  %216 = vmatmul.bf16.gmra.mxu2 %v553_v17 }
  0x51   :  { %201 = vmatmul.bf16.gmra.mxu0 %v550_v19  ;;  %221 = vmatmul.bf16.gmra.mxu2 %v554_v20 }
  0x9e   :  { %v187_v24 = vpop.f32.mrf.mxu0 }
  0x9f   :  { %v278_v26 = vmax.f32 %v187_v24, 0.0 }
  0xa4   :  { %v207_v25 = vpop.f32.mrf.mxu2 }
  0xa5   :  { %v286_v31 = vmax.f32 %v207_v25, 0.0 }
  0xa6   :  { %v189_v27 = vpop.f32.mrf.mxu0 }
  0xa7   :  { %v279_v28 = vmax.f32 %v189_v27, 0.0 }
  0xa9   :  { %v294_v29 = vpack.c.bf16 %v279_v28, %v278_v26 }
  0xab   :  { %374 = vmatmul.bf16.vlgmr.msra.gmra.mxu1 %v294_v29 }
  0xac   :  { %v209_v30 = vpop.f32.mrf.mxu2 }
  0xad   :  { %v287_v32 = vmax.f32 %v209_v30, 0.0 }
  0xae   :  { %v192_v33 = vpop.f32.mrf.mxu0 }
  0xaf   :  { %v298_v34 = vpack.c.bf16 %v287_v32, %v286_v31  ;;  %v280_v36 = vmax.f32 %v192_v33, 0.0 }
  0xb1   :  { %394 = vmatmul.bf16.vlgmr.msra.gmra.mxu3 %v298_v34 }
  0xb4   :  { %v212_v35 = vpop.f32.mrf.mxu2 }
  0xb5   :  { %v288_v41 = vmax.f32 %v212_v35, 0.0 }
  0xb6   :  { %v194_v37 = vpop.f32.mrf.mxu0 }
  0xb7   :  { %v281_v38 = vmax.f32 %v194_v37, 0.0 }
  0xb9   :  { %v295_v39 = vpack.c.bf16 %v281_v38, %v280_v36 }
  0xbb   :  { %379 = vmatmul.bf16.gmra.mxu1 %v295_v39 }
  0xbc   :  { %v214_v40 = vpop.f32.mrf.mxu2 }
  0xbd   :  { %v289_v42 = vmax.f32 %v214_v40, 0.0 }
  0xbe   :  { %v197_v43 = vpop.f32.mrf.mxu0 }
  0xbf   :  { %v299_v44 = vpack.c.bf16 %v289_v42, %v288_v41  ;;  %v282_v46 = vmax.f32 %v197_v43, 0.0 }
  0xc1   :  { %399 = vmatmul.bf16.gmra.mxu3 %v299_v44 }
  0xc4   :  { %v217_v45 = vpop.f32.mrf.mxu2 }
  0xc5   :  { %v290_v51 = vmax.f32 %v217_v45, 0.0 }
  0xc6   :  { %v199_v47 = vpop.f32.mrf.mxu0 }
  0xc7   :  { %v283_v48 = vmax.f32 %v199_v47, 0.0 }
  0xc9   :  { %v296_v49 = vpack.c.bf16 %v283_v48, %v282_v46 }
  0xcb   :  { %384 = vmatmul.bf16.gmra.mxu1 %v296_v49 }
  0xcc   :  { %v219_v50 = vpop.f32.mrf.mxu2 }
  0xcd   :  { %v291_v52 = vmax.f32 %v219_v50, 0.0 }
  0xce   :  { %v202_v53 = vpop.f32.mrf.mxu0 }
  0xcf   :  { %v300_v54 = vpack.c.bf16 %v291_v52, %v290_v51  ;;  %v284_v56 = vmax.f32 %v202_v53, 0.0 }
  0xd1   :  { %404 = vmatmul.bf16.gmra.mxu3 %v300_v54 }
  0xd4   :  { %v222_v55 = vpop.f32.mrf.mxu2 }
  0xd5   :  { %v292_v61 = vmax.f32 %v222_v55, 0.0 }
  0xd6   :  { %v204_v57 = vpop.f32.mrf.mxu0 }
  0xd7   :  { %v285_v58 = vmax.f32 %v204_v57, 0.0 }
  0xd9   :  { %v297_v59 = vpack.c.bf16 %v285_v58, %v284_v56 }
  0xdb   :  { %389 = vmatmul.bf16.gmra.mxu1 %v297_v59 }
  0xdc   :  { %v224_v60 = vpop.f32.mrf.mxu2 }
  0xdd   :  { %v293_v62 = vmax.f32 %v224_v60, 0.0 }
  0xdf   :  { %v301_v63 = vpack.c.bf16 %v293_v62, %v292_v61 }
  0xe1   :  { %409 = vmatmul.bf16.gmra.mxu3 %v301_v63 }
 0x128   :  { %v375_v0 = vpop.f32.mrf.mxu1 }
 0x130   :  { %v377_v1 = vpop.f32.mrf.mxu1 }
 0x131   :  { %v574_v2 = vpack.c.bf16 %v377_v1, %v375_v0 }
 0x133   :  { %575 = vst [vmem:[%s753_s3] sm:$0xff] %v574_v2  }
 0x134   :  { %v395_v3 = vpop.f32.mrf.mxu3 }
 0x138   :  { %v380_v4 = vpop.f32.mrf.mxu1 }
 0x13c   :  { %v397_v5 = vpop.f32.mrf.mxu3 }
 0x13d   :  { %v594_v6 = vpack.c.bf16 %v397_v5, %v395_v3 }
 0x13f   :  { %614 = vst [vmem:[%s753_s3 + $0x20] sm:$0xff] %v594_v6  }
 0x140   :  { %v382_v7 = vpop.f32.mrf.mxu1 }
 0x141   :  { %v579_v8 = vpack.c.bf16 %v382_v7, %v380_v4 }
 0x143   :  { %611 = vst [vmem:[%s753_s3 + $0x8] sm:$0xff] %v579_v8  }
 0x144   :  { %v400_v9 = vpop.f32.mrf.mxu3 }
 0x148   :  { %v385_v10 = vpop.f32.mrf.mxu1 }
 0x14c   :  { %v402_v11 = vpop.f32.mrf.mxu3 }
 0x14d   :  { %v599_v12 = vpack.c.bf16 %v402_v11, %v400_v9 }
 0x14f   :  { %615 = vst [vmem:[%s753_s3 + $0x28] sm:$0xff] %v599_v12  }
 0x150   :  { %v387_v13 = vpop.f32.mrf.mxu1 }
 0x151   :  { %v584_v14 = vpack.c.bf16 %v387_v13, %v385_v10 }
 0x153   :  { %612 = vst [vmem:[%s753_s3 + $0x10] sm:$0xff] %v584_v14  }
 0x154   :  { %v405_v15 = vpop.f32.mrf.mxu3 }
 0x158   :  { %v390_v16 = vpop.f32.mrf.mxu1 }
 0x15c   :  { %v407_v17 = vpop.f32.mrf.mxu3 }
 0x15d   :  { %v604_v18 = vpack.c.bf16 %v407_v17, %v405_v15 }
 0x15f   :  { %616 = vst [vmem:[%s753_s3 + $0x30] sm:$0xff] %v604_v18  }
 0x160   :  { %v392_v19 = vpop.f32.mrf.mxu1 }
 0x161   :  { %v589_v20 = vpack.c.bf16 %v392_v19, %v390_v16 }
 0x163   :  { %613 = vst [vmem:[%s753_s3 + $0x18] sm:$0xff] %v589_v20  }
 0x164   :  { %v410_v21 = vpop.f32.mrf.mxu3 }
 0x16c   :  { %v412_v22 = vpop.f32.mrf.mxu3 }
 0x16d   :  { %v609_v23 = vpack.c.bf16 %v412_v22, %v410_v21 }
 0x16f   :  { %617 = vst [vmem:[%s753_s3 + $0x38] sm:$0xff] %v609_v23  }

// kernel: gcn_model_ae_forward.4
= control target key start
LH: loop header
LB: loop body
LE: loop exit
PB: predicated region body
PF: predicated region fallthrough
CT: control target
= control target key end

     0   :  { %vm100_vm0 = vcmask 523264   ;;  %s420_s1 = inlined_call_operand.vmem [shape: bf16[64,128], index: 1, kind: input, shape index: {}]   ;;  %s421_s0 = inlined_call_operand.vmem [shape: bf16[128,64], index: 0, kind: input, shape index: {}]   ;;  %s422_s2 = inlined_call_operand.vmem [shape: bf16[128,128], index: 2, kind: output, shape index: {}]  }
   0x1   :  { %v277_v0 = vld [vmem:[%s420_s1 + $0x18] sm:$0xff]  ;;  %v276_v1 = vld [vmem:[%s420_s1 + $0x10] sm:$0xff]  ;;  %v275_v2 = vld [vmem:[%s420_s1 + $0x8] sm:$0xff] }
   0x2   :  { %129 = vmatpush.bf16.msra.mxu0 %v277_v0  ;;  %325 = vmatpush.bf16.msra.mxu1 %v277_v0  ;;  %v274_v3 = vld [vmem:[%s420_s1] sm:$0xff]  ;;  %v268_v5 = vld [vmem:[%s421_s0 + $0x10] sm:$0xff]  ;;  %v267_v8 = vld [vmem:[%s421_s0 + $0x8] sm:$0xff] }
   0x3   :  { %326 = vmatpush.bf16.msra.mxu2 %v277_v0  ;;  %327 = vmatpush.bf16.msra.mxu3 %v277_v0  ;;  %v266_v4 = vld [vmem:[%s421_s0] sm:$0xff]  ;;  %v272_v7 = vld [vmem:[%s421_s0 + $0x30] sm:$0xff]  ;;  %v269_v9 = vld [vmem:[%s421_s0 + $0x18] sm:$0xff] }
   0x4   :  { %v270_v6 = vld [vmem:[%s421_s0 + $0x20] sm:$0xff]  ;;  %v271_v10 = vld [vmem:[%s421_s0 + $0x28] sm:$0xff]  ;;  %v273_v11 = vld [vmem:[%s421_s0 + $0x38] sm:$0xff] }
   0x6   :  { %130 = vmatpush.bf16.msra.mxu0 %v276_v1  ;;  %328 = vmatpush.bf16.msra.mxu1 %v276_v1 }
   0x7   :  { %329 = vmatpush.bf16.msra.mxu2 %v276_v1  ;;  %330 = vmatpush.bf16.msra.mxu3 %v276_v1 }
   0xa   :  { %131 = vmatpush.bf16.msra.mxu0 %v275_v2  ;;  %331 = vmatpush.bf16.msra.mxu1 %v275_v2 }
   0xb   :  { %332 = vmatpush.bf16.msra.mxu2 %v275_v2  ;;  %333 = vmatpush.bf16.msra.mxu3 %v275_v2 }
   0xe   :  { %132 = vmatpush.bf16.msra.mxu0 %v274_v3  ;;  %334 = vmatpush.bf16.msra.mxu1 %v274_v3 }
   0xf   :  { %335 = vmatpush.bf16.msra.mxu2 %v274_v3  ;;  %336 = vmatpush.bf16.msra.mxu3 %v274_v3 }
  0x11   :  { %258 = vmatmul.msk.bf16.vlgmr.msra.gmra.mxu0 %vm100_vm0, %v266_v4  ;;  %260 = vmatmul.msk.bf16.vlgmr.msra.gmra.mxu1 %vm100_vm0, %v268_v5 }
  0x12   :  { %262 = vmatmul.msk.bf16.vlgmr.msra.gmra.mxu2 %vm100_vm0, %v270_v6  ;;  %264 = vmatmul.msk.bf16.vlgmr.msra.gmra.mxu3 %vm100_vm0, %v272_v7 }
  0x21   :  { %259 = vmatmul.msk.bf16.gmra.mxu0 %vm100_vm0, %v267_v8  ;;  %261 = vmatmul.msk.bf16.gmra.mxu1 %vm100_vm0, %v269_v9 }
  0x22   :  { %263 = vmatmul.msk.bf16.gmra.mxu2 %vm100_vm0, %v271_v10  ;;  %265 = vmatmul.msk.bf16.gmra.mxu3 %vm100_vm0, %v273_v11 }
  0x8e   :  { %v134_v12 = vpop.f32.mrf.mxu0  ;;  %v144_v13 = vpop.f32.mrf.mxu1 }
  0x95   :  { %v154_v14 = vpop.f32.mrf.mxu2  ;;  %v164_v15 = vpop.f32.mrf.mxu3 }
  0x96   :  { %v136_v16 = vpop.f32.mrf.mxu0  ;;  %v146_v17 = vpop.f32.mrf.mxu1 }
  0x97   :  { %v281_v18 = vpack.c.bf16 %v136_v16, %v134_v12  ;;  %v291_v19 = vpack.c.bf16 %v146_v17, %v144_v13 }
  0x99   :  { %282 = vst [vmem:[%s422_s2] sm:$0xff] %v281_v18  }
  0x9a   :  { %319 = vst [vmem:[%s422_s2 + $0x10] sm:$0xff] %v291_v19  }
  0x9d   :  { %v156_v20 = vpop.f32.mrf.mxu2  ;;  %v166_v21 = vpop.f32.mrf.mxu3 }
  0x9e   :  { %v301_v22 = vpack.c.bf16 %v156_v20, %v154_v14  ;;  %v311_v23 = vpack.c.bf16 %v166_v21, %v164_v15  ;;  %v139_v24 = vpop.f32.mrf.mxu0  ;;  %v149_v25 = vpop.f32.mrf.mxu1 }
  0xa0   :  { %321 = vst [vmem:[%s422_s2 + $0x20] sm:$0xff] %v301_v22  }
  0xa1   :  { %323 = vst [vmem:[%s422_s2 + $0x30] sm:$0xff] %v311_v23  }
  0xa5   :  { %v159_v26 = vpop.f32.mrf.mxu2  ;;  %v169_v27 = vpop.f32.mrf.mxu3 }
  0xa6   :  { %v141_v28 = vpop.f32.mrf.mxu0  ;;  %v151_v29 = vpop.f32.mrf.mxu1 }
  0xa7   :  { %v286_v30 = vpack.c.bf16 %v141_v28, %v139_v24  ;;  %v296_v31 = vpack.c.bf16 %v151_v29, %v149_v25 }
  0xa9   :  { %318 = vst [vmem:[%s422_s2 + $0x8] sm:$0xff] %v286_v30  }
  0xaa   :  { %320 = vst [vmem:[%s422_s2 + $0x18] sm:$0xff] %v296_v31  }
  0xad   :  { %v161_v32 = vpop.f32.mrf.mxu2  ;;  %v171_v33 = vpop.f32.mrf.mxu3 }
  0xae   :  { %v306_v34 = vpack.c.bf16 %v161_v32, %v159_v26  ;;  %v316_v35 = vpack.c.bf16 %v171_v33, %v169_v27 }
  0xb0   :  { %322 = vst [vmem:[%s422_s2 + $0x28] sm:$0xff] %v306_v34  }
  0xb1   :  { %324 = vst [vmem:[%s422_s2 + $0x38] sm:$0xff] %v316_v35  }

// kernel: gcn_model_ae_forward.7
= control target key start
LH: loop header
LB: loop body
LE: loop exit
PB: predicated region body
PF: predicated region fallthrough
CT: control target
= control target key end

     0   :  { %s494_s0 = inlined_call_operand.vmem [shape: bf16[128,128], index: 0, kind: input, shape index: {}]   ;;  %s495_s1 = inlined_call_operand.hbm [shape: bf16[128,128], index: 1, kind: output, shape index: {}]  }
   0x1   :  { %v329_v0 = vld [vmem:[%s494_s0 + $0x38] sm:$0xff] }
   0x2   :  { %6 = vsyncpa [#allocation3], 0  ;;  %147 = vmatpush.bf16.xpose.msra.mxu0 %v329_v0  ;;  %377 = vmatpush.bf16.xpose.msra.mxu1 %v329_v0  ;;  %v328_v1 = vld [vmem:[%s494_s0 + $0x30] sm:$0xff]  ;;  %v327_v2 = vld [vmem:[%s494_s0 + $0x28] sm:$0xff]  ;;  %s234_s12 = sshll.u32 %s495_s1, 4  ;;  %s431_s13 = smov 64   ;;  %s235_s12 = int_to_ptr.hbm [resolvable:$true] %s234_s12 }
   0x3   :  { %378 = vmatpush.bf16.xpose.msra.mxu2 %v329_v0  ;;  %379 = vmatpush.bf16.xpose.msra.mxu3 %v329_v0  ;;  %v326_v3 = vld [vmem:[%s494_s0 + $0x20] sm:$0xff]  ;;  %v325_v4 = vld [vmem:[%s494_s0 + $0x18] sm:$0xff]  ;;  %v324_v5 = vld [vmem:[%s494_s0 + $0x10] sm:$0xff]  ;;  %s432_s14 = smov 4  }
   0x4   :  { %v323_v6 = vld [vmem:[%s494_s0 + $0x8] sm:$0xff]  ;;  %v322_v7 = vld [vmem:[%s494_s0] sm:$0xff]  ;;  %v316_v9 = vld [vmem:[%s494_s0 + $0x10] sm:$0xff] }
   0x5   :  { %v314_v8 = vld [vmem:[%s494_s0] sm:$0xff]  ;;  %v320_v11 = vld [vmem:[%s494_s0 + $0x30] sm:$0xff]  ;;  %v315_v12 = vld [vmem:[%s494_s0 + $0x8] sm:$0xff] }
   0x6   :  { %v318_v10 = vld [vmem:[%s494_s0 + $0x20] sm:$0xff]  ;;  %v317_v13 = vld [vmem:[%s494_s0 + $0x18] sm:$0xff]  ;;  %v319_v14 = vld [vmem:[%s494_s0 + $0x28] sm:$0xff] }
   0x7   :  { %v321_v15 = vld [vmem:[%s494_s0 + $0x38] sm:$0xff]  ;;  %s430_s0 = smov [#allocation2]  }
   0x8   :  { %s232_s9 = sshll.u32 %s430_s0, 4  ;;  %s233_s9 = int_to_ptr.vmem [resolvable:$true] %s232_s9 }
   0xa   :  { %148 = vmatpush.bf16.xpose.msra.mxu0 %v328_v1  ;;  %380 = vmatpush.bf16.xpose.msra.mxu1 %v328_v1 }
   0xb   :  { %381 = vmatpush.bf16.xpose.msra.mxu2 %v328_v1  ;;  %382 = vmatpush.bf16.xpose.msra.mxu3 %v328_v1 }
  0x12   :  { %149 = vmatpush.bf16.xpose.msra.mxu0 %v327_v2  ;;  %383 = vmatpush.bf16.xpose.msra.mxu1 %v327_v2 }
  0x13   :  { %384 = vmatpush.bf16.xpose.msra.mxu2 %v327_v2  ;;  %385 = vmatpush.bf16.xpose.msra.mxu3 %v327_v2 }
  0x1a   :  { %150 = vmatpush.bf16.xpose.msra.mxu0 %v326_v3  ;;  %386 = vmatpush.bf16.xpose.msra.mxu1 %v326_v3 }
  0x1b   :  { %387 = vmatpush.bf16.xpose.msra.mxu2 %v326_v3  ;;  %388 = vmatpush.bf16.xpose.msra.mxu3 %v326_v3 }
  0x22   :  { %151 = vmatpush.bf16.xpose.msra.mxu0 %v325_v4  ;;  %389 = vmatpush.bf16.xpose.msra.mxu1 %v325_v4 }
  0x23   :  { %390 = vmatpush.bf16.xpose.msra.mxu2 %v325_v4  ;;  %391 = vmatpush.bf16.xpose.msra.mxu3 %v325_v4 }
  0x2a   :  { %152 = vmatpush.bf16.xpose.msra.mxu0 %v324_v5  ;;  %392 = vmatpush.bf16.xpose.msra.mxu1 %v324_v5 }
  0x2b   :  { %393 = vmatpush.bf16.xpose.msra.mxu2 %v324_v5  ;;  %394 = vmatpush.bf16.xpose.msra.mxu3 %v324_v5 }
  0x32   :  { %153 = vmatpush.bf16.xpose.msra.mxu0 %v323_v6  ;;  %395 = vmatpush.bf16.xpose.msra.mxu1 %v323_v6 }
  0x33   :  { %396 = vmatpush.bf16.xpose.msra.mxu2 %v323_v6  ;;  %397 = vmatpush.bf16.xpose.msra.mxu3 %v323_v6 }
  0x3a   :  { %154 = vmatpush.bf16.xpose.msra.mxu0 %v322_v7  ;;  %398 = vmatpush.bf16.xpose.msra.mxu1 %v322_v7 }
  0x3b   :  { %399 = vmatpush.bf16.xpose.msra.mxu2 %v322_v7  ;;  %400 = vmatpush.bf16.xpose.msra.mxu3 %v322_v7 }
  0x41   :  { %155 = vmatmul.bf16.vlgmr.msra.gmra.mxu0 %v314_v8  ;;  %165 = vmatmul.bf16.vlgmr.msra.gmra.mxu1 %v316_v9 }
  0x42   :  { %175 = vmatmul.bf16.vlgmr.msra.gmra.mxu2 %v318_v10  ;;  %185 = vmatmul.bf16.vlgmr.msra.gmra.mxu3 %v320_v11 }
  0x51   :  { %160 = vmatmul.bf16.gmra.mxu0 %v315_v12  ;;  %170 = vmatmul.bf16.gmra.mxu1 %v317_v13 }
  0x52   :  { %180 = vmatmul.bf16.gmra.mxu2 %v319_v14  ;;  %190 = vmatmul.bf16.gmra.mxu3 %v321_v15 }
  0xbe   :  { %v156_v16 = vpop.f32.mrf.mxu0  ;;  %v166_v17 = vpop.f32.mrf.mxu1 }
  0xc5   :  { %v176_v18 = vpop.f32.mrf.mxu2  ;;  %v186_v19 = vpop.f32.mrf.mxu3 }
  0xc6   :  { %v158_v20 = vpop.f32.mrf.mxu0  ;;  %v168_v21 = vpop.f32.mrf.mxu1 }
  0xc7   :  { %v333_v22 = vpack.c.bf16 %v158_v20, %v156_v16  ;;  %v343_v23 = vpack.c.bf16 %v168_v21, %v166_v17 }
  0xc9   :  { %334 = vst [vmem:[#allocation2] sm:$0xff] %v333_v22  }
  0xca   :  { %371 = vst [vmem:[#allocation2 + $0x10] sm:$0xff] %v343_v23  }
  0xcd   :  { %v178_v24 = vpop.f32.mrf.mxu2  ;;  %v188_v25 = vpop.f32.mrf.mxu3 }
  0xce   :  { %v353_v26 = vpack.c.bf16 %v178_v24, %v176_v18  ;;  %v363_v27 = vpack.c.bf16 %v188_v25, %v186_v19  ;;  %v161_v28 = vpop.f32.mrf.mxu0  ;;  %v171_v29 = vpop.f32.mrf.mxu1 }
  0xd0   :  { %373 = vst [vmem:[#allocation2 + $0x20] sm:$0xff] %v353_v26  }
  0xd1   :  { %375 = vst [vmem:[#allocation2 + $0x30] sm:$0xff] %v363_v27  }
  0xd5   :  { %v181_v30 = vpop.f32.mrf.mxu2  ;;  %v191_v31 = vpop.f32.mrf.mxu3 }
  0xd6   :  { %v163_v32 = vpop.f32.mrf.mxu0  ;;  %v173_v33 = vpop.f32.mrf.mxu1 }
  0xd7   :  { %v338_v34 = vpack.c.bf16 %v163_v32, %v161_v28  ;;  %v348_v35 = vpack.c.bf16 %v173_v33, %v171_v29 }
  0xd9   :  { %370 = vst [vmem:[#allocation2 + $0x8] sm:$0xff] %v338_v34  }
  0xda   :  { %372 = vst [vmem:[#allocation2 + $0x18] sm:$0xff] %v348_v35  }
  0xdd   :  { %v183_v36 = vpop.f32.mrf.mxu2  ;;  %v193_v37 = vpop.f32.mrf.mxu3 }
  0xde   :  { %v358_v38 = vpack.c.bf16 %v183_v36, %v181_v30  ;;  %v368_v39 = vpack.c.bf16 %v193_v37, %v191_v31 }
  0xe0   :  { %374 = vst [vmem:[#allocation2 + $0x28] sm:$0xff] %v358_v38  }
  0xe1   :  { %376 = vst [vmem:[#allocation2 + $0x38] sm:$0xff] %v368_v39  }
  0xe2   :  { %240 = dma.vmem_to_hbm [thread:$0]  %s233_s9, 1024, %s235_s12, [#allocation3], %s431_s13, %s431_s13, %s432_s14  }
  0xe3   :  { %428 = dma.done.wait [#allocation3], 1024  }
  0xe4   :  { %429 = vsyncadd [#allocation3], 4294966272 }
  0xe5   :  { %245 = vsyncpa [#allocation3], 1 }

</bundles_post_ra>
